<compile_context>
chip_gen: v7x
topology: tpu7x:2x2x1
jax: 0.10.0
libtpu: 0.0.40
codegen_flags: <defaults>
</compile_context>

<pallas_src>
import functools

import jax
import jax.numpy as jnp
from jax import lax
from jax.experimental import pallas as pl
from jax.experimental.pallas import tpu as pltpu


_UNROLL_C_MAX = 64  # static Python unroll over channels up to this C


def _normalize_kernel(x_ref, o_ref, *, power):
    """x_ref / o_ref block shape: (C, Rb, Cb)."""
    C, Rb, Cb = x_ref.shape
    p = float(power)
    ip = int(round(p))
    small_int_p = (p == ip) and (2 <= ip <= 8)

    def elem_pow(v):
        # Small integer powers -> repeated VALU multiplies (p=2 -> v*v).
        if small_int_p:
            r = v
            for _ in range(ip - 1):
                r = r * v
            return r
        return jnp.power(v, p)  # general float p uses the EUP exp/log path

    # ---- pass 1: channel reduction (f32 accumulation) ----
    if C <= _UNROLL_C_MAX:
        s = elem_pow(x_ref[0].astype(jnp.float32))
        for c in range(1, C):
            s = s + elem_pow(x_ref[c].astype(jnp.float32))
    else:
        def body(c, acc):
            return acc + elem_pow(x_ref[c].astype(jnp.float32))
        s = lax.fori_loop(0, C, body,
                          jnp.zeros((Rb, Cb), jnp.float32), unroll=4)

    # ---- inverse norm, once per (row, col) ----
    if p == 2.0:
        inv = lax.rsqrt(s)
    else:
        inv = jnp.power(s, -1.0 / p)

    # ---- pass 2: scale & store (pure VALU multiplies, lane-dense stores) ----
    if C <= _UNROLL_C_MAX:
        for c in range(C):
            o_ref[c] = (x_ref[c].astype(jnp.float32) * inv).astype(o_ref.dtype)
    else:
        def body2(c, carry):
            o_ref[c] = (x_ref[c].astype(jnp.float32) * inv).astype(o_ref.dtype)
            return carry
        lax.fori_loop(0, C, body2, 0, unroll=4)


def _cdiv(a, b):
    return -(-a // b)


def normalize(x, power=2):
    """x: (N, C, ...) array; normalizes along dim 1 like the PyTorch module."""
    orig_shape = x.shape
    N, C = x.shape[0], x.shape[1]
    HW = 1
    for s in x.shape[2:]:
        HW *= s
    HW = max(HW, 1)

    itemsize = jnp.dtype(x.dtype).itemsize
    sub = {4: 8, 2: 16, 1: 32}.get(itemsize, 8)  # dtype sublane tile

    # ---- generation-aware VMEM budget ----
    try:
        vmem_cap = int(pltpu.get_tpu_info().vmem_capacity_bytes)
    except Exception:
        vmem_cap = 0
    if not vmem_cap:
        vmem_cap = 64 * 1024 * 1024
    # v5e/v6e (128 MiB physical) -> 64 MiB scoped; v7x (64 MiB) -> 48 MiB.
    vmem_limit = min(64 * 1024 * 1024, (vmem_cap * 3) // 4)
    # in + out, each double-buffered (= 4x block), plus f32 accumulator/temps.
    target_block_bytes = max(64 * 1024, vmem_limit // 8)

    # ---- factor HW = R * COLS with COLS a (large) multiple of 128 ----
    COLS = 0
    for cand in range(2048, 127, -128):
        if HW % cand == 0:
            COLS = cand
            break
    if COLS == 0:
        COLS = HW  # no 128-multiple divisor: block the 1-D spatial axis below
    R = HW // COLS

    # ---- last-dim block width Cb: multiple of 128 (or full tiny dim) ----
    min_rb = R if R < sub else sub
    if COLS < 128:
        Cb = COLS  # tiny spatial: full (padded) lane dim, perf irrelevant
    elif (COLS % 128 == 0
          and C * min_rb * COLS * itemsize <= target_block_bytes):
        Cb = COLS  # keep each channel's rows contiguous for the block DMA
    else:
        budget_cb = target_block_bytes // max(1, C * min_rb * itemsize)
        Cb = max(128, min((COLS // 128) * 128, (budget_cb // 128) * 128, 4096))

    # ---- rows per block Rb: multiple of the sublane tile (or full dim) ----
    if R <= sub:
        Rb = R
    else:
        target_rows = target_block_bytes // max(1, C * Cb * itemsize)
        Rb = min(R, max(sub, (target_rows // sub) * sub))

    # ---- guarantee >=2 grid steps so both v7x TensorCores get work ----
    if N * _cdiv(R, Rb) * _cdiv(COLS, Cb) < 2:
        if R > sub:
            Rb = min(Rb, ((((R + 1) // 2) + sub - 1) // sub) * sub)
        elif COLS >= 256 and Cb % 128 == 0:
            Cb = min(Cb, ((((COLS + 1) // 2) + 127) // 128) * 128)

    x4 = x.reshape(N, C, R, COLS)  # trailing-dim reshape: no data movement

    kernel = functools.partial(_normalize_kernel, power=float(power))

    out = pl.pallas_call(
        kernel,
        out_shape=jax.ShapeDtypeStruct((N, C, R, COLS), x.dtype),
        grid_spec=pltpu.PrefetchScalarGridSpec(
            num_scalar_prefetch=0,
            grid=(N, _cdiv(R, Rb), _cdiv(COLS, Cb)),
            in_specs=[
                pl.BlockSpec((None, C, Rb, Cb), lambda n, r, c: (n, 0, r, c)),
            ],
            out_specs=pl.BlockSpec((None, C, Rb, Cb),
                                   lambda n, r, c: (n, 0, r, c)),
        ),
        compiler_params=pltpu.CompilerParams(
            dimension_semantics=("parallel", "parallel", "parallel"),
            vmem_limit_bytes=int(vmem_limit),
        ),
    )(x4)

    return out.reshape(orig_shape)


if __name__ == "__main__":
    key = jax.random.PRNGKey(0)
    x = jax.random.normal(key, (2, 4, 16, 16), dtype=jnp.float32)

    out = jax.block_until_ready(normalize(x, power=2))

    # reference (plain JAX) check
    norm_ref = jnp.power(jnp.sum(jnp.power(x, 2.0), axis=1, keepdims=True), 0.5)
    ref = x / norm_ref
    assert out.shape == x.shape and out.dtype == x.dtype
    assert jnp.allclose(out, ref, atol=1e-5, rtol=1e-5), "mismatch vs reference"

    print("KERNEL_OK")
</pallas_src>

<mosaic_0001>
module attributes {stable_mosaic.version = 11 : i64} {
  func.func @_normalize_kernel(%arg0: i32, %arg1: i32, %arg2: i32, %arg3: memref<1x4x1x256xf32, #tpu.memory_space<vmem>>, %arg4: memref<1x4x1x256xf32, #tpu.memory_space<vmem>>) attributes {dimension_semantics = [#tpu.dimension_semantics<parallel>, #tpu.dimension_semantics<parallel>, #tpu.dimension_semantics<parallel>], iteration_bounds = array<i64: 2, 1, 1>, scalar_prefetch = 0 : i64, scratch_operands = 0 : i64, tpu.core_type = #tpu.core_type<tc>, window_params = [{transform_indices = @transform_0, window_bounds = array<i64: 1, 4, 1, 256>}, {transform_indices = @transform_1, window_bounds = array<i64: 1, 4, 1, 256>}]} {
    %c0 = arith.constant 0 : index
    %c0_0 = arith.constant 0 : index
    %c0_1 = arith.constant 0 : index
    %c0_2 = arith.constant 0 : index
    %0 = vector.load %arg3[%c0, %c0_0, %c0_1, %c0_2] : memref<1x4x1x256xf32, #tpu.memory_space<vmem>>, vector<1x1x1x256xf32>
    %1 = vector.shape_cast %0 : vector<1x1x1x256xf32> to vector<1x256xf32>
    %2 = arith.mulf %1, %1 : vector<1x256xf32>
    %c0_3 = arith.constant 0 : index
    %c1 = arith.constant 1 : index
    %c0_4 = arith.constant 0 : index
    %c0_5 = arith.constant 0 : index
    %3 = vector.load %arg3[%c0_3, %c1, %c0_4, %c0_5] : memref<1x4x1x256xf32, #tpu.memory_space<vmem>>, vector<1x1x1x256xf32>
    %4 = vector.shape_cast %3 : vector<1x1x1x256xf32> to vector<1x256xf32>
    %5 = arith.mulf %4, %4 : vector<1x256xf32>
    %6 = arith.addf %2, %5 : vector<1x256xf32>
    %c0_6 = arith.constant 0 : index
    %c2 = arith.constant 2 : index
    %c0_7 = arith.constant 0 : index
    %c0_8 = arith.constant 0 : index
    %7 = vector.load %arg3[%c0_6, %c2, %c0_7, %c0_8] : memref<1x4x1x256xf32, #tpu.memory_space<vmem>>, vector<1x1x1x256xf32>
    %8 = vector.shape_cast %7 : vector<1x1x1x256xf32> to vector<1x256xf32>
    %9 = arith.mulf %8, %8 : vector<1x256xf32>
    %10 = arith.addf %6, %9 : vector<1x256xf32>
    %c0_9 = arith.constant 0 : index
    %c3 = arith.constant 3 : index
    %c0_10 = arith.constant 0 : index
    %c0_11 = arith.constant 0 : index
    %11 = vector.load %arg3[%c0_9, %c3, %c0_10, %c0_11] : memref<1x4x1x256xf32, #tpu.memory_space<vmem>>, vector<1x1x1x256xf32>
    %12 = vector.shape_cast %11 : vector<1x1x1x256xf32> to vector<1x256xf32>
    %13 = arith.mulf %12, %12 : vector<1x256xf32>
    %14 = arith.addf %10, %13 : vector<1x256xf32>
    %15 = math.rsqrt %14 : vector<1x256xf32>
    %c0_12 = arith.constant 0 : index
    %c0_13 = arith.constant 0 : index
    %c0_14 = arith.constant 0 : index
    %c0_15 = arith.constant 0 : index
    %16 = vector.load %arg3[%c0_12, %c0_13, %c0_14, %c0_15] : memref<1x4x1x256xf32, #tpu.memory_space<vmem>>, vector<1x1x1x256xf32>
    %17 = vector.shape_cast %16 : vector<1x1x1x256xf32> to vector<1x256xf32>
    %18 = arith.mulf %17, %15 : vector<1x256xf32>
    %c0_16 = arith.constant 0 : index
    %c0_17 = arith.constant 0 : index
    %c0_18 = arith.constant 0 : index
    %c0_19 = arith.constant 0 : index
    %19 = vector.load %arg4[%c0_16, %c0_17, %c0_18, %c0_19] : memref<1x4x1x256xf32, #tpu.memory_space<vmem>>, vector<1x1x1x256xf32>
    %20 = vector.shape_cast %19 : vector<1x1x1x256xf32> to vector<1x256xf32>
    %21 = vector.shape_cast %18 : vector<1x256xf32> to vector<1x1x1x256xf32>
    tpu.vector_store %arg4[%c0_16, %c0_17, %c0_18, %c0_19], %21 {strides = array<i32>} : memref<1x4x1x256xf32, #tpu.memory_space<vmem>>, vector<1x1x1x256xf32>,
    %c0_20 = arith.constant 0 : index
    %c1_21 = arith.constant 1 : index
    %c0_22 = arith.constant 0 : index
    %c0_23 = arith.constant 0 : index
    %22 = vector.load %arg3[%c0_20, %c1_21, %c0_22, %c0_23] : memref<1x4x1x256xf32, #tpu.memory_space<vmem>>, vector<1x1x1x256xf32>
    %23 = vector.shape_cast %22 : vector<1x1x1x256xf32> to vector<1x256xf32>
    %24 = arith.mulf %23, %15 : vector<1x256xf32>
    %c0_24 = arith.constant 0 : index
    %c1_25 = arith.constant 1 : index
    %c0_26 = arith.constant 0 : index
    %c0_27 = arith.constant 0 : index
    %25 = vector.load %arg4[%c0_24, %c1_25, %c0_26, %c0_27] : memref<1x4x1x256xf32, #tpu.memory_space<vmem>>, vector<1x1x1x256xf32>
    %26 = vector.shape_cast %25 : vector<1x1x1x256xf32> to vector<1x256xf32>
    %27 = vector.shape_cast %24 : vector<1x256xf32> to vector<1x1x1x256xf32>
    tpu.vector_store %arg4[%c0_24, %c1_25, %c0_26, %c0_27], %27 {strides = array<i32>} : memref<1x4x1x256xf32, #tpu.memory_space<vmem>>, vector<1x1x1x256xf32>,
    %c0_28 = arith.constant 0 : index
    %c2_29 = arith.constant 2 : index
    %c0_30 = arith.constant 0 : index
    %c0_31 = arith.constant 0 : index
    %28 = vector.load %arg3[%c0_28, %c2_29, %c0_30, %c0_31] : memref<1x4x1x256xf32, #tpu.memory_space<vmem>>, vector<1x1x1x256xf32>
    %29 = vector.shape_cast %28 : vector<1x1x1x256xf32> to vector<1x256xf32>
    %30 = arith.mulf %29, %15 : vector<1x256xf32>
    %c0_32 = arith.constant 0 : index
    %c2_33 = arith.constant 2 : index
    %c0_34 = arith.constant 0 : index
    %c0_35 = arith.constant 0 : index
    %31 = vector.load %arg4[%c0_32, %c2_33, %c0_34, %c0_35] : memref<1x4x1x256xf32, #tpu.memory_space<vmem>>, vector<1x1x1x256xf32>
    %32 = vector.shape_cast %31 : vector<1x1x1x256xf32> to vector<1x256xf32>
    %33 = vector.shape_cast %30 : vector<1x256xf32> to vector<1x1x1x256xf32>
    tpu.vector_store %arg4[%c0_32, %c2_33, %c0_34, %c0_35], %33 {strides = array<i32>} : memref<1x4x1x256xf32, #tpu.memory_space<vmem>>, vector<1x1x1x256xf32>,
    %c0_36 = arith.constant 0 : index
    %c3_37 = arith.constant 3 : index
    %c0_38 = arith.constant 0 : index
    %c0_39 = arith.constant 0 : index
    %34 = vector.load %arg3[%c0_36, %c3_37, %c0_38, %c0_39] : memref<1x4x1x256xf32, #tpu.memory_space<vmem>>, vector<1x1x1x256xf32>
    %35 = vector.shape_cast %34 : vector<1x1x1x256xf32> to vector<1x256xf32>
    %36 = arith.mulf %35, %15 : vector<1x256xf32>
    %c0_40 = arith.constant 0 : index
    %c3_41 = arith.constant 3 : index
    %c0_42 = arith.constant 0 : index
    %c0_43 = arith.constant 0 : index
    %37 = vector.load %arg4[%c0_40, %c3_41, %c0_42, %c0_43] : memref<1x4x1x256xf32, #tpu.memory_space<vmem>>, vector<1x1x1x256xf32>
    %38 = vector.shape_cast %37 : vector<1x1x1x256xf32> to vector<1x256xf32>
    %39 = vector.shape_cast %36 : vector<1x256xf32> to vector<1x1x1x256xf32>
    tpu.vector_store %arg4[%c0_40, %c3_41, %c0_42, %c0_43], %39 {strides = array<i32>} : memref<1x4x1x256xf32, #tpu.memory_space<vmem>>, vector<1x1x1x256xf32>,
    return
  }
  func.func @transform_0(%arg0: i32, %arg1: i32, %arg2: i32) -> (i32, i32, i32, i32) {
    %c0_i32 = arith.constant 0 : i32
    %c0_i32_0 = arith.constant 0 : i32
    return %arg0, %c0_i32, %arg1, %arg2 : i32, i32, i32, i32
  }
  func.func @transform_1(%arg0: i32, %arg1: i32, %arg2: i32) -> (i32, i32, i32, i32) {
    %c0_i32 = arith.constant 0 : i32
    %c0_i32_0 = arith.constant 0 : i32
    return %arg0, %c0_i32, %arg1, %arg2 : i32, i32, i32, i32
  }
}

</mosaic_0001>

<bundles_post_ra>
// kernel: tpu_custom_call.1
= control target key start
LH: loop header
LB: loop body
LE: loop exit
PB: predicated region body
PF: predicated region fallthrough
CT: control target
= control target key end

     0   :  { %6 = vsyncpa [#allocation3], 0  ;;  %s712_s0 = inlined_call_operand.hbm [shape: f32[2,4,1,256], index: 0, kind: input, shape index: {}]   ;;  %s713_s1 = inlined_call_operand.hbm [shape: f32[2,4,1,256], index: 1, kind: output, shape index: {}]  }
   0x1   :  { %8 = vsyncpa [#allocation3 + $0x1], 0 }
   0x2   :  { %9 = vsyncpa [#allocation4], 0 }
   0x3   :  { %11 = vsyncpa [#allocation4 + $0x1], 0  ;;  %s537_s6 = smov 0   ;;  %s539_s7 = smov 0  }
   0x4   :  { %s541_s8 = smov 0   ;;  %s543_s9 = smov 0  }
   0x5   :  { %s545_s10 = smov 0   ;;  %s547_s11 = smov 0  }
   0x6 LB: > { %s313_s12 = sadd.s32 4294967295, %s519_s11   ;;  %s314_s13 = sadd.s32 4294967294, %s519_s11   ;;  %s519_s11 = sphi %s547_s11, %s17_s11   ;;  %s515_s10 = sphi %s545_s10, %s728_s10   ;;  %s511_s9 = sphi %s543_s9, %s727_s9   ;;  %s507_s8 = sphi %s541_s8, %s726_s8   ;;  %s503_s7 = sphi %s539_s7, %s725_s7   ;;  %s499_s6 = sphi %s537_s6, %s724_s6  }
   0x7   : > { %s36_s14 = sadd.s32 1, %s515_s10  ;;  %s47_s15 = sadd.s32 1, %s507_s8 }
   0x8   : > { %p38_p0 = scmp.ge.s32.totalorder %s36_s14, 2  ;;  %p54_p1 = scmp.ne.s32.totalorder %s507_s8, %s503_s7 }
   0x9   : > { %p55_p2 = scmp.eq.s32.totalorder %s519_s11, 0  ;;  %p60_p3 = scmp.ne.s32.totalorder %s503_s7, %s499_s6 }
   0xa   : > { %s730_s14 = smov (%p38_p0, %s36_s14), 0  ;;  %p61_p5 = scmp.eq.s32.totalorder %s313_s12, 0 }
   0xb   : > { %p578_p4 = por %p55_p2, %p54_p1  ;;  %s40_s17 = ssub.s32 %s515_s10, %s730_s14 }
   0xc   : > { %p88_p6 = scmp.eq.s32.totalorder %s313_s12, 1  ;;  %p45_p7 = scmp.eq.s32.totalorder %s40_s17, 0 }
   0xd   : > { %p584_p8 = por %p61_p5, %p60_p3  ;;  %p94_p10 = scmp.eq.s32.totalorder %s314_s13, 1 }
   0xe   : > { %p588_p9 = por %p88_p6, %p54_p1  ;;  %p351_p13 = scmp.lt.s32.totalorder %s519_s11, 2 }
   0xf   : > { %s593_s20 = scalar_select %p45_p7, %s507_s8, %s47_s15  }
  0x10   : > { %s717_s19 = scalar_select %p588_p9, 1, 0 }
  0x11   : > { %p595_p11 = por %p94_p10, %p60_p3  ;;  %s114_s22 = sand.u32 1, %s507_s8  }
  0x12   : > { %s317_s23 = sshll.u32 %s114_s22, 3  ;;  %s337_s24 = sshll.u32 %s515_s10, 7 }
  0x13   : > { %s718_s21 = scalar_select %p595_p11, 1, 0 }
  0x14   : > { %s606_s27 = scalar_lea.hbm %s712_s0, %s337_s24  ;;  %s118_s28 = scalar_lea.vmem [#allocation2], %s317_s23 }
  0x15   : > { %s129_s29 = sshll.u32 %s118_s28, 4  ;;  %p612_p0 = pnand %p351_p13, %p578_p4  ;;  %s608_s29 = int_to_ptr.vmem [resolvable:$true] %s129_s29 }
  0x16   : > { %s617_s2 = scalar_lea.sflag [#allocation3], %s114_s22  ;;  %s407_s3 = scalar_lea.hbm %s606_s27, 128 }
  0x17   : > { %p408_p2 = scmp.ne.s32.totalorder %s606_s27, %s407_s3  ;;  %p409_p3 = pneg %p612_p0 }
  0x18   : > { %s412_s12 = scalar_lea.hbm %s712_s0, 256  ;;  %p413_p4 = scmp.lt.u32.totalorder %s606_s27, %s712_s0 }
  0x19   : > { %p410_p5 = pnand %p409_p3, %p408_p2  ;;  %p414_p7 = scmp.lt.u32.totalorder %s412_s12, %s407_s3 }
  0x1a   : > { %p416_p13 = scmp.lt.u32.totalorder %s407_s3, %s606_s27 }
  0x1b   : > { %p411_p6 = pneg %p410_p5  ;;  %p415_p10 = por %p414_p7, %p413_p4 }
  0x1d   : > { %p417_p12 = por %p416_p13, %p415_p10 }
  0x1f   : > { %p418_p1 = pnand %p417_p12, %p411_p6 }
  0x21   : > { %421 = shalt.err (!%p418_p1)
}
  0x22   : > { %s422_s16 = scalar_lea.vmem %s608_s29, 128  ;;  %s521_s17 = smov [#allocation2]  }
  0x23   : > { %p423_p2 = scmp.ne.s32.totalorder %s608_s29, %s422_s16  ;;  %s427_s22 = sshll.u32 %s521_s17, 4  ;;  %s428_s22 = int_to_ptr.vmem [resolvable:$false] %s427_s22 }
  0x24   : > { %s429_s23 = scalar_lea.vmem %s428_s22, 256  ;;  %p430_p9 = scmp.lt.s32.totalorder %s608_s29, %s428_s22 }
  0x25   : > { %p425_p5 = pnand %p423_p2, %p409_p3  ;;  %p431_p4 = scmp.lt.s32.totalorder %s429_s23, %s422_s16 }
  0x27   : > { %p426_p11 = pneg %p425_p5  ;;  %p432_p7 = por %p431_p4, %p430_p9 }
  0x29   : > { %p433_p10 = pnand %p432_p7, %p426_p11 }
  0x2b   : > { %436 = shalt.err (!%p433_p10)
}
  0x2c   : > { %s522_s24 = smov 32   ;;  %s523_s25 = smov 2  }
  0x2d   : > { %346 = dma.hbm_to_vmem [thread:$0]  (!%p612_p0), %s606_s27, 128, %s608_s29, %s617_s2, %s522_s24, %s522_s24, %s523_s25  }
  0x2e   : > { %p137_p12 = scmp.lt.s32.totalorder %s519_s11, 3  ;;  %p720_p1 = scmp.ge.s32.totalorder %s519_s11, 1 }
  0x30   : > { %p138_p3 = pnand %p720_p1, %p137_p12 }
  0x31   : > { %s649_s26 = sand.u32 (!%p138_p3), 1, %s503_s7  }
  0x32   : > { %141 = sbr.rel (%p138_p3) target bundleno = 96 (0x60), region = 24  ;;  %s321_s28 = sshll.u32 (!%p138_p3), %s649_s26, 3 }
  0x33   : > { %s144_s3 = scalar_lea.sflag (!%p138_p3), [#allocation3], %s649_s26  ;;  %s147_s4 = scalar_lea.vmem (!%p138_p3), [#allocation2], %s321_s28 }
  0x39   : > { %490 = dma.done.wait (%p584_p8), %s144_s3, 128  }
  0x3a   : > { %492 = vsyncadd (%p584_p8), %s144_s3, 4294967168  ;;  %v168_v0 = vld [vmem:[%s147_s4] sm:$0x3]  ;;  %v323_v1 = vld [vmem:[%s147_s4 + $0x2] sm:$0x3]  ;;  %v184_v11 = vlaneseq  ;;  %s165_s27 = scalar_lea.vmem [#allocation5], %s321_s28 }
  0x3b   : > { %v324_v2 = vld [vmem:[%s147_s4 + $0x4] sm:$0x3]  ;;  %v169_v3 = vmul.f32 %v168_v0, %v168_v0  ;;  %v172_v4 = vmul.f32 %v323_v1, %v323_v1  ;;  %v325_v6 = vld [vmem:[%s147_s4 + $0x6] sm:$0x3]  ;;  %s219_s29 = sshll.u32 %s165_s27, 4  ;;  %s338_s30 = sshll.u32 %s511_s9, 7  ;;  %s658_s29 = int_to_ptr.vmem [resolvable:$true] %s219_s29 }
  0x3c   : > { %v176_v5 = vmul.f32 %v324_v2, %v324_v2  ;;  %v180_v8 = vmul.f32 %v325_v6, %v325_v6  ;;  %v326_v12 = vld [vmem:[%s147_s4 + $0x2] sm:$0x3]  ;;  %v328_v13 = vld [vmem:[%s147_s4 + $0x4] sm:$0x3]  ;;  %v330_v14 = vld [vmem:[%s147_s4 + $0x6] sm:$0x3]  ;;  %s663_s5 = scalar_lea.hbm %s713_s1, %s338_s30 }
  0x3d   : > { %v173_v7 = vadd.f32 %v172_v4, %v169_v3  ;;  %vm186_vm0 = vcmp.lt.s32.totalorder %v184_v11, 256  ;;  %s202_s9 = scalar_lea.sflag [#allocation4], %s649_s26  ;;  %s437_s12 = scalar_lea.vmem %s658_s29, 128 }
  0x3e   : > { %p438_p8 = scmp.ne.s32.totalorder %s658_s29, %s437_s12  ;;  %p721_p9 = scmp.ne.s32.totalorder %s717_s19, 0 }
  0x3f   : > { %v177_v9 = vadd.f32 %v176_v5, %v173_v7  ;;  %s524_s13 = smov [#allocation5]  }
  0x40   : > { %p439_p11 = pnand %p438_p8, %p721_p9  ;;  %s441_s15 = sshll.u32 %s524_s13, 4  ;;  %s442_s15 = int_to_ptr.vmem [resolvable:$false] %s441_s15 }
  0x41   : > { %v181_v10 = vadd.f32 %v180_v8, %v177_v9  ;;  %s443_s16 = scalar_lea.vmem %s442_s15, 256  ;;  %p444_p6 = scmp.lt.s32.totalorder %s658_s29, %s442_s15 }
  0x42   : > { %p440_p0 = pneg %p439_p11  ;;  %p445_p13 = scmp.lt.s32.totalorder %s443_s16, %s437_s12 }
  0x43   : > { %405 = vrsqrt.f32 %v181_v10 }
  0x44   : > { %p446_p2 = por %p445_p13, %p444_p6 }
  0x46   : > { %p447_p5 = pnand %p446_p2, %p440_p0 }
  0x4d   : > { %v406_v15 = vpop.eup %405 }
  0x4e   : > { %v183_v16 = vmul.f32 %v406_v15, %v168_v0  ;;  %v190_v17 = vmul.f32 %v406_v15, %v326_v12  ;;  %v194_v18 = vmul.f32 %v406_v15, %v328_v13  ;;  %v198_v19 = vmul.f32 %v406_v15, %v330_v14 }
  0x50   : > { %188 = vst.msk [vmem:[%s165_s27] sm:$0x3] %vm186_vm0, %v183_v16  ;;  %327 = vst.msk [vmem:[%s165_s27 + $0x2] sm:$0x3] %vm186_vm0, %v190_v17 }
  0x51   : > { %329 = vst.msk [vmem:[%s165_s27 + $0x4] sm:$0x3] %vm186_vm0, %v194_v18  ;;  %331 = vst.msk [vmem:[%s165_s27 + $0x6] sm:$0x3] %vm186_vm0, %v198_v19 }
  0x52   : > { %450 = shalt.err (!%p447_p5)
}
  0x53   : > { %s451_s17 = scalar_lea.hbm %s663_s5, 128  ;;  %s455_s24 = scalar_lea.hbm %s713_s1, 256 }
  0x54   : > { %p452_p4 = scmp.ne.s32.totalorder %s663_s5, %s451_s17  ;;  %p456_p12 = scmp.lt.u32.totalorder %s663_s5, %s713_s1 }
  0x55   : > { %p457_p1 = scmp.lt.u32.totalorder %s455_s24, %s451_s17  ;;  %p459_p8 = scmp.lt.u32.totalorder %s451_s17, %s663_s5 }
  0x56   : > { %p453_p7 = pnand %p452_p4, %p721_p9 }
  0x57   : > { %p458_p3 = por %p457_p1, %p456_p12 }
  0x58   : > { %p454_p10 = pneg %p453_p7 }
  0x59   : > { %p460_p11 = por %p459_p8, %p458_p3 }
  0x5b   : > { %p461_p0 = pnand %p460_p11, %p454_p10 }
  0x5d   : > { %464 = shalt.err (!%p461_p0)
}
  0x5e   : > { %s525_s3 = smov 32   ;;  %s526_s4 = smov 2  }
  0x5f   : > { %341 = dma.vmem_to_hbm [thread:$0]  (%p721_p9), %s658_s29, 128, %s663_s5, %s202_s9, %s525_s3, %s525_s3, %s526_s4  }
  0x60 PF: > { %s234_s27 = sand.u32 1, %s499_s6   ;;  %p722_p6 = scmp.ne.s32.totalorder %s718_s21, 0 }
  0x61   : > { %p723_p13 = scmp.ge.s32.totalorder %s519_s11, 2  ;;  %s235_s30 = scalar_lea.sflag [#allocation4], %s234_s27 }
  0x63   : > { %p348_p2 = pnand %p723_p13, %p722_p6 }
  0x65   : > { %494 = dma.done.wait (!%p348_p2), %s235_s30, 128  }
  0x66   : > { %496 = vsyncadd (!%p348_p2), %s235_s30, 4294967168  ;;  %s17_s11 = sadd.s32 1, %s519_s11   ;;  %s724_s6 = smov %s503_s7 }
  0x67   : > { %p14_p5 = scmp.ge.s32.totalorder %s17_s11, 4   ;;  %s725_s7 = smov %s507_s8 }
  0x68   : > { %s726_s8 = smov %s593_s20  ;;  %s727_s9 = smov %s515_s10 }
  0x69   : > { %s728_s10 = smov %s730_s14  ;;  %16 = sbr.rel (!%p14_p5) target bundleno = 6 (0x6), region = 75 }
  0x70   :  { %240 = vsyncpa [#allocation3], 1 }
  0x71   :  { %242 = vsyncpa [#allocation3 + $0x1], 1 }
  0x72   :  { %243 = vsyncpa [#allocation4], 1 }
  0x73   :  { %245 = vsyncpa [#allocation4 + $0x1], 1 }

</bundles_post_ra>
